<compile_context>
chip_gen: v6e
topology: v6e:2x2x1
jax: 0.10.0
libtpu: 0.0.40
codegen_flags: <defaults>
</compile_context>

<pallas_src>
import jax
import jax.numpy as jnp
from jax.experimental import pallas as pl
from jax.experimental.pallas import tpu as pltpu

EPS = 1e-6


def _reference_norm(x, gamma, beta):
    """Pure-JAX reference (and fallback path for lane-sparse D < 128)."""
    mean = jnp.mean(x, axis=-1, keepdims=True)
    std = jnp.std(x, axis=-1, keepdims=True, ddof=1)  # torch.std: unbiased
    return gamma * (x - mean) / (std + EPS) + beta


def _layer_norm_kernel(gamma_ref, beta_ref, x_ref, o_ref):
    # x_ref: (ROW_TILE, D) block in VMEM; gamma/beta: (1,) scalars in SMEM.
    x = x_ref[...].astype(jnp.float32)
    d = x.shape[-1]
    mean = jnp.mean(x, axis=-1, keepdims=True)
    diff = x - mean
    # torch.std is unbiased (ddof=1) by default.
    var = jnp.sum(diff * diff, axis=-1, keepdims=True) / jnp.float32(d - 1)
    std = jnp.sqrt(var)
    # Exact per-row reciprocal (approx=False keeps numerics within 1e-5 tol);
    # only ROW_TILE reciprocals instead of a full-tile divide.
    inv = pl.reciprocal(std + jnp.float32(EPS), approx=False)  # (ROW_TILE, 1)
    g = gamma_ref[0].astype(jnp.float32)
    b = beta_ref[0].astype(jnp.float32)
    # Fold gamma into the per-row scale: one full-tile multiply + one add.
    # NOTE: garbage rows in a ragged last block stay row-local (all reductions
    # are per-row) and their stores are masked, so valid rows are unaffected.
    o_ref[...] = (diff * (g * inv) + b).astype(o_ref.dtype)


def _sublane_multiple(dtype):
    itemsize = jnp.dtype(dtype).itemsize
    return max(8, 32 // max(1, itemsize))  # 8 for f32, 16 for bf16, 32 for i8


def _vmem_capacity_bytes():
    """Physical VMEM of the attached TPU; conservative default if unknown."""
    try:
        return int(pltpu.get_tpu_info().vmem_capacity_bytes)
    except Exception:
        return 64 * 1024 * 1024  # assume v7x-sized VMEM if query fails


def _pick_tiling(rows, d, dtype):
    """(row_tile, vmem_limit_bytes) sized per TPU generation.

    Block budget is counted in f32-equivalent bytes because the kernel upcasts
    to f32 internally, so the f32 working set (not the input dtype) is what
    fills VMEM.
    """
    cap = _vmem_capacity_bytes()
    if cap >= 128 * 1024 * 1024:           # v5e / v6e (128 MiB VMEM)
        block_budget = 8 * 1024 * 1024
        vmem_limit = 64 * 1024 * 1024
    else:                                  # v7x (64 MiB VMEM per TC)
        block_budget = 4 * 1024 * 1024
        vmem_limit = 48 * 1024 * 1024

    sub = _sublane_multiple(dtype)
    max_rows = max(sub, block_budget // max(1, d * 4))
    row_tile = max(sub, (max_rows // sub) * sub)
    # No point tiling larger than the (sublane-padded) row count.
    rows_ceil = ((rows + sub - 1) // sub) * sub
    return min(row_tile, rows_ceil), vmem_limit


def pallas_layer_norm(x, gamma, beta, *, row_tile=None):
    """LayerNormalization matching the PyTorch module, over the last axis."""
    orig_shape = x.shape
    d = orig_shape[-1]

    if d < 128:
        # Lane-sparse: only d of 128 lanes would be used and every store would
        # be a masked vst.msk — plain XLA is faster here.
        # TODO(synk): pack 128//d rows per vreg row with a segmented reduction
        # to keep small-D in Pallas lane-dense.
        return _reference_norm(x, gamma[0], beta[0]).astype(x.dtype)

    x2 = x.reshape(-1, d)
    rows = x2.shape[0]

    auto_tile, vmem_limit = _pick_tiling(rows, d, x.dtype)
    if row_tile is None:
        row_tile = auto_tile
    num_tiles = pl.cdiv(rows, row_tile)

    out = pl.pallas_call(
        _layer_norm_kernel,
        out_shape=jax.ShapeDtypeStruct((rows, d), x.dtype),
        grid_spec=pl.GridSpec(
            grid=(num_tiles,),
            in_specs=[
                pl.BlockSpec(memory_space=pltpu.MemorySpace.SMEM),  # gamma
                pl.BlockSpec(memory_space=pltpu.MemorySpace.SMEM),  # beta
                pl.BlockSpec((row_tile, d), lambda i: (i, 0)),
            ],
            out_specs=pl.BlockSpec((row_tile, d), lambda i: (i, 0)),
        ),
        compiler_params=pltpu.CompilerParams(
            # Row axis is embarrassingly parallel; lets multi-TC parts shard
            # grid steps (no-op on single-TC v5e/v6e).
            # TODO(synk): if a v7x profile shows one TC doing all steps, switch
            # to pltpu.CORE_PARALLEL / pl.core_map over a 2-core mesh.
            dimension_semantics=("parallel",),
            vmem_limit_bytes=vmem_limit,
        ),
    )(gamma, beta, x2)

    return out.reshape(orig_shape)


class Decoder:
    """JAX/Pallas port of the PyTorch Decoder (layer stack is pass-through)."""

    def __init__(self, layers=()):
        self.layers = tuple(layers)
        # LayerNormalization params (scalar gamma/beta, init to ones).
        self.gamma = jnp.ones((1,), dtype=jnp.float32)
        self.beta = jnp.ones((1,), dtype=jnp.float32)

    def __call__(self, encoder_output, src_mask, x, target_mask):
        # TODO(synk): plug real decoder-layer kernels in here (and fuse the
        # final norm into the last layer's epilogue) once they are defined.
        for layer in self.layers:
            x = layer(x, encoder_output, src_mask, target_mask)
        return pallas_layer_norm(x, self.gamma, self.beta)


if __name__ == "__main__":
    key = jax.random.PRNGKey(0)
    k1, k2, k3, k4 = jax.random.split(key, 4)

    decoder = Decoder(layers=())

    # --- main path: small shape consistent with the forward signature -------
    batch, seq, d_model = 2, 8, 128
    x = jax.random.normal(k1, (batch, seq, d_model), dtype=jnp.float32)
    encoder_output = jax.random.normal(k2, (batch, seq, d_model),
                                       dtype=jnp.float32)
    src_mask = jnp.ones((batch, 1, 1, seq), dtype=jnp.float32)
    target_mask = jnp.tril(jnp.ones((seq, seq), dtype=jnp.float32))[None, None]

    out = jax.block_until_ready(decoder(encoder_output, src_mask, x,
                                        target_mask))
    ref = _reference_norm(x, decoder.gamma[0], decoder.beta[0])
    assert out.shape == x.shape
    assert jnp.allclose(out, ref, atol=1e-5, rtol=1e-5), "mismatch vs reference"

    # --- ragged rows: rows=111 not a multiple of 8, single (oversized) block -
    b2, s2, d2 = 3, 37, 256
    x2 = jax.random.normal(k3, (b2, s2, d2), dtype=jnp.float32)
    out2 = jax.block_until_ready(
        pallas_layer_norm(x2, decoder.gamma, decoder.beta))
    ref2 = _reference_norm(x2, decoder.gamma[0], decoder.beta[0])
    assert out2.shape == x2.shape
    assert jnp.allclose(out2, ref2, atol=1e-5, rtol=1e-5), "mismatch (ragged)"

    # --- ragged last block with multiple grid steps (masked final stores) ----
    out3 = jax.block_until_ready(
        pallas_layer_norm(x2, decoder.gamma, decoder.beta, row_tile=64))
    assert jnp.allclose(out3, ref2, atol=1e-5, rtol=1e-5), \
        "mismatch (multi-block ragged)"

    # --- lane-sparse small-D fallback path -----------------------------------
    x4 = jax.random.normal(k4, (2, 8, 32), dtype=jnp.float32)
    out4 = jax.block_until_ready(
        pallas_layer_norm(x4, decoder.gamma, decoder.beta))
    ref4 = _reference_norm(x4, decoder.gamma[0], decoder.beta[0])
    assert jnp.allclose(out4, ref4, atol=1e-5, rtol=1e-5), "mismatch (small D)"

    print("KERNEL_OK")
</pallas_src>

<mosaic_0001>
module attributes {stable_mosaic.version = 11 : i64} {
  func.func @_layer_norm_kernel(%arg0: i32, %arg1: memref<1xf32, #tpu.memory_space<smem>>, %arg2: memref<1xf32, #tpu.memory_space<smem>>, %arg3: memref<16x128xf32, #tpu.memory_space<vmem>>, %arg4: memref<16x128xf32, #tpu.memory_space<vmem>>) attributes {dimension_semantics = [#tpu.dimension_semantics<parallel>], iteration_bounds = array<i64: 1>, scalar_prefetch = 0 : i64, scratch_operands = 0 : i64, tpu.core_type = #tpu.core_type<tc>, window_params = [{transform_indices = @transform_0, window_bounds = array<i64: 1>}, {transform_indices = @transform_1, window_bounds = array<i64: 1>}, {transform_indices = @transform_2, window_bounds = array<i64: 16, 128>}, {transform_indices = @transform_3, window_bounds = array<i64: 16, 128>}]} {
    %c0 = arith.constant 0 : index
    %c0_0 = arith.constant 0 : index
    %0 = vector.load %arg3[%c0, %c0_0] : memref<16x128xf32, #tpu.memory_space<vmem>>, vector<16x128xf32>
    %cst = arith.constant dense<0.000000e+00> : vector<16xf32>
    %1 = vector.multi_reduction <add>, %0, %cst [1] : vector<16x128xf32> to vector<16xf32>
    %2 = vector.shape_cast %1 : vector<16xf32> to vector<16x1xf32>
    %cst_1 = arith.constant 1.280000e+02 : f32
    %3 = vector.broadcast %cst_1 : f32 to vector<16x1xf32>
    %4 = arith.divf %2, %3 : vector<16x1xf32>
    %5 = vector.broadcast %4 : vector<16x1xf32> to vector<16x128xf32>
    %6 = arith.subf %0, %5 : vector<16x128xf32>
    %7 = arith.mulf %6, %6 : vector<16x128xf32>
    %cst_2 = arith.constant dense<0.000000e+00> : vector<16xf32>
    %8 = vector.multi_reduction <add>, %7, %cst_2 [1] : vector<16x128xf32> to vector<16xf32>
    %9 = vector.shape_cast %8 : vector<16xf32> to vector<16x1xf32>
    %cst_3 = arith.constant 1.270000e+02 : f32
    %10 = vector.broadcast %cst_3 : f32 to vector<16x1xf32>
    %11 = arith.divf %9, %10 : vector<16x1xf32>
    %12 = math.sqrt %11 : vector<16x1xf32>
    %cst_4 = arith.constant 9.99999997E-7 : f32
    %13 = vector.broadcast %cst_4 : f32 to vector<16x1xf32>
    %14 = arith.addf %12, %13 : vector<16x1xf32>
    %15 = tpu.reciprocal %14 : vector<16x1xf32> -> vector<16x1xf32>
    %c0_5 = arith.constant 0 : index
    %16 = memref.load %arg1[%c0_5] : memref<1xf32, #tpu.memory_space<smem>>
    %c0_6 = arith.constant 0 : index
    %17 = memref.load %arg2[%c0_6] : memref<1xf32, #tpu.memory_space<smem>>
    %18 = vector.broadcast %16 : f32 to vector<16x1xf32>
    %19 = arith.mulf %18, %15 : vector<16x1xf32>
    %20 = vector.broadcast %19 : vector<16x1xf32> to vector<16x128xf32>
    %21 = arith.mulf %6, %20 : vector<16x128xf32>
    %22 = vector.broadcast %17 : f32 to vector<16x128xf32>
    %23 = arith.addf %21, %22 : vector<16x128xf32>
    %c0_7 = arith.constant 0 : index
    %c0_8 = arith.constant 0 : index
    %24 = vector.load %arg4[%c0_7, %c0_8] : memref<16x128xf32, #tpu.memory_space<vmem>>, vector<16x128xf32>
    tpu.vector_store %arg4[%c0_7, %c0_8], %23 {strides = array<i32>} : memref<16x128xf32, #tpu.memory_space<vmem>>, vector<16x128xf32>,
    return
  }
  func.func @transform_0(%arg0: i32) -> i32 {
    %c0_i32 = arith.constant 0 : i32
    %c0_i32_0 = arith.constant 0 : i32
    return %c0_i32 : i32
  }
  func.func @transform_1(%arg0: i32) -> i32 {
    %c0_i32 = arith.constant 0 : i32
    %c0_i32_0 = arith.constant 0 : i32
    return %c0_i32 : i32
  }
  func.func @transform_2(%arg0: i32) -> (i32, i32) {
    %c0_i32 = arith.constant 0 : i32
    %c0_i32_0 = arith.constant 0 : i32
    return %arg0, %c0_i32 : i32, i32
  }
  func.func @transform_3(%arg0: i32) -> (i32, i32) {
    %c0_i32 = arith.constant 0 : i32
    %c0_i32_0 = arith.constant 0 : i32
    return %arg0, %c0_i32 : i32, i32
  }
}

</mosaic_0001>

<bundles_post_ra>
// kernel: tpu_custom_call.1
= control target key start
LH: loop header
LB: loop body
LE: loop exit
PB: predicated region body
PF: predicated region fallthrough
CT: control target
= control target key end

     0   :  { %10 = vsyncpa [#allocation5], 0  ;;  %s196_s0 = inlined_call_operand.<no memory space> [shape: f32[1], index: 0, kind: input, shape index: {}]   ;;  %s197_s1 = inlined_call_operand.<no memory space> [shape: f32[1], index: 1, kind: input, shape index: {}]   ;;  %s198_s2 = inlined_call_operand.hbm [shape: f32[16,128], index: 2, kind: input, shape index: {}]   ;;  %s199_s3 = inlined_call_operand.hbm [shape: f32[16,128], index: 3, kind: output, shape index: {}]  }
   0x1   :  { %11 = vsyncpa [#allocation6], 0  ;;  %s154_s12 = smov [#allocation4]  }
   0x2   :  { %s21_s13 = sshll.u32 %s154_s12, 4  ;;  %s22_s13 = int_to_ptr.vmem [resolvable:$true] %s21_s13 }
   0x3   :  { %s118_s14 = scalar_lea.vmem %s22_s13, 256  ;;  %p123_p1 = scmp.lt.s32.totalorder %s22_s13, %s22_s13 }
   0x4   :  { %p119_p0 = scmp.ne.s32.totalorder %s22_s13, %s118_s14  ;;  %p124_p2 = scmp.lt.s32.totalorder %s118_s14, %s118_s14 }
   0x6   :  { %p125_p3 = por %p124_p2, %p123_p1 }
   0x8   :  { %p126_p4 = pnand %p125_p3, %p119_p0 }
   0xa   :  { %129 = shalt.err (!%p126_p4)
}
   0xb   :  { %s155_s15 = smov 128   ;;  %s156_s16 = smov 8  }
   0xc   :  { %27 = dma.hbm_to_vmem [thread:$0]  %s198_s2, 256, %s22_s13, [#allocation5], %s155_s15, %s155_s15, %s156_s16  }
   0xd   :  { %150 = dma.done.wait [#allocation5], 256  }
   0xe   :  { %151 = vsyncadd [#allocation5], 4294967040  ;;  %v31_v0 = vld [vmem:[#allocation4] sm:$0xff]  ;;  %v32_v1 = vld [vmem:[#allocation4 + $0x8] sm:$0xff]  ;;  %v71_v26 = vstv %s196_s0  ;;  %v76_v29 = vstv %s197_s1  ;;  %s157_s22 = smov [#allocation7]  }
   0xf   :  { %33 = vadd.xlane.f32.xlu0 %v31_v0  ;;  %s86_s23 = sshll.u32 %s157_s22, 4  ;;  %s87_s23 = int_to_ptr.vmem [resolvable:$true] %s86_s23 }
  0x10   :  { %s130_s24 = scalar_lea.vmem %s87_s23, 256  ;;  %p135_p6 = scmp.lt.s32.totalorder %s87_s23, %s87_s23 }
  0x11   :  { %p131_p5 = scmp.ne.s32.totalorder %s87_s23, %s130_s24  ;;  %p136_p7 = scmp.lt.s32.totalorder %s130_s24, %s130_s24 }
  0x13   :  { %35 = vadd.xlane.f32.xlu0 %v32_v1  ;;  %p137_p8 = por %p136_p7, %p135_p6 }
  0x15   :  { %p138_p9 = pnand %p137_p8, %p131_p5 }
  0x98   :  { %v34_v2 = vpop.xlane.xlu0 %33 }
  0x99   :  { %v38_v3 = vmul.f32 0.0078125, %v34_v2 }
  0x9b   :  { %v40_v4 = vsub.f32 %v31_v0, %v38_v3 }
  0x9c   :  { %v36_v5 = vpop.xlane.xlu0 %35 }
  0x9d   :  { %v39_v6 = vmul.f32 0.0078125, %v36_v5  ;;  %v42_v7 = vmul.f32 %v40_v4, %v40_v4 }
  0x9f   :  { %v41_v8 = vsub.f32 %v32_v1, %v39_v6  ;;  %44 = vadd.xlane.f32.xlu1 %v42_v7 }
  0xa1   :  { %v43_v9 = vmul.f32 %v41_v8, %v41_v8 }
  0xa3   :  { %46 = vadd.xlane.f32.xlu1 %v43_v9 }
 0x128   :  { %v45_v10 = vpop.xlane.xlu1 %44 }
 0x129   :  { %v49_v11 = vmul.f32 0.007874016, %v45_v10 }
 0x12b   :  { %102 = vrsqrt.f32 %v49_v11  ;;  %vm53_vm0 = vcmp.eq.f32.partialorder %v49_v11, inf  ;;  %v56_v16 = vand.u32 2147483648, %v49_v11  ;;  %vm55_vm1 = vcmp.eq.f32.partialorder %v49_v11, 0.0 }
 0x12c   :  { %v47_v12 = vpop.xlane.xlu1 %46 }
 0x12d   :  { %v50_v13 = vmul.f32 0.007874016, %v47_v12 }
 0x12f   :  { %104 = vrsqrt.f32 %v50_v13  ;;  %vm60_vm2 = vcmp.eq.f32.partialorder %v50_v13, inf  ;;  %v63_v22 = vand.u32 2147483648, %v50_v13  ;;  %vm62_vm3 = vcmp.eq.f32.partialorder %v50_v13, 0.0 }
 0x138   :  { %v103_v14 = vpop.eup %102 }
 0x139   :  { %v52_v15 = vmul.f32 %v103_v14, %v49_v11 }
 0x13b   :  { %v54_v17 = vsel %vm53_vm0, %v49_v11, %v52_v15 }
 0x13c   :  { %v105_v18 = vpop.eup %104  ;;  %v57_v19 = vsel %vm55_vm1, %v56_v16, %v54_v17 }
 0x13d   :  { %v65_v20 = vadd.f32 1e-06, %v57_v19  ;;  %v59_v21 = vmul.f32 %v105_v18, %v50_v13 }
 0x13f   :  { %106 = vrcp.f32 %v65_v20  ;;  %v61_v23 = vsel %vm60_vm2, %v50_v13, %v59_v21 }
 0x140   :  { %v64_v24 = vsel %vm62_vm3, %v63_v22, %v61_v23 }
 0x141   :  { %v66_v25 = vadd.f32 1e-06, %v64_v24 }
 0x143   :  { %108 = vrcp.f32 %v66_v25 }
 0x14c   :  { %v107_v27 = vpop.eup %106 }
 0x14d   :  { %v72_v28 = vmul.f32 %v107_v27, %v71_v26 }
 0x14f   :  { %v74_v30 = vmul.f32 %v72_v28, %v40_v4 }
 0x150   :  { %v109_v31 = vpop.eup %108 }
 0x151   :  { %v73_v32 = vmul.f32 %v109_v31, %v71_v26  ;;  %v77_v33 = vadd.f32 %v76_v29, %v74_v30 }
 0x153   :  { %v75_v34 = vmul.f32 %v73_v32, %v41_v8  ;;  %79 = vst [vmem:[#allocation7] sm:$0xff] %v77_v33 }
 0x155   :  { %v78_v35 = vadd.f32 %v76_v29, %v75_v34 }
 0x157   :  { %80 = vst [vmem:[#allocation7 + $0x8] sm:$0xff] %v78_v35 }
 0x158   :  { %141 = shalt.err (!%p138_p9)
}
 0x159   :  { %92 = dma.vmem_to_hbm [thread:$0]  %s87_s23, 256, %s199_s3, [#allocation6], %s155_s15, %s155_s15, %s156_s16  }
 0x15a   :  { %152 = dma.done.wait [#allocation6], 256  }
 0x15b   :  { %153 = vsyncadd [#allocation6], 4294967040 }
 0x15c   :  { %96 = vsyncpa [#allocation5], 1 }
 0x15d   :  { %97 = vsyncpa [#allocation6], 1 }

</bundles_post_ra>
